<compile_context>
chip_gen: v5e
topology: v5e:2x2
jax: 0.10.0
libtpu: 0.0.40
codegen_flags: <defaults>
</compile_context>

<pallas_src>
import functools

import jax
import jax.numpy as jnp
from jax.experimental import pallas as pl
from jax.experimental.pallas import tpu as pltpu


def _mobile_block_kernel(xm_ref, xh_ref, wdw_ref, b1_ref, wpw_ref, b2_ref,
                         out_ref, *, kernel_size, dilation, tl, halo_len,
                         use_halo, mxu_bf16):
    """One (batch, L-tile) grid step.   All tensors NCL-native (C sublane, L lane).

    xm_ref  : (1, Cin, ML)   main padded-input lanes [t*TL, t*TL + ML)
    xh_ref  : (1, Cin, HB)   right-halo lanes (the HB lanes after the main block)
    wdw_ref : (Cin, K)       depthwise weights with BN1 scale folded in (f32)
    b1_ref  : (Cin, 1)       folded BN1 bias (includes depthwise conv bias)
    wpw_ref : (Cout, Cin)    pointwise weights with BN2 scale folded in
    b2_ref  : (Cout, 1)      folded BN2 bias (includes pointwise conv bias)
    out_ref : (1, Cout, TL)  output tile, NCL layout (lane-dense along L)
    """
    xm = xm_ref[0]                                          # (Cin, ML) act dtype
    if use_halo:
        # only the tiny halo tail is appended; main block is not re-copied twice
        xw = jnp.concatenate([xm, xh_ref[0][:, :halo_len]], axis=1)
    else:
        xw = xm
    xw = xw.astype(jnp.float32)                             # single upcast (VPU math f32)

    wdw = wdw_ref[...]                                      # (Cin, K) f32

    # ---- depthwise conv (VPU): static lane-offset taps, acc init from tap 0 ----
    acc = xw[:, 0:tl] * wdw[:, 0:1]
    for k in range(1, kernel_size):                         # static unrolled taps
        o = k * dilation
        acc = acc + xw[:, o:o + tl] * wdw[:, k:k + 1]

    # ---- folded BN1 bias + ReLU (scale already folded into wdw) ----
    h = jnp.maximum(acc + b1_ref[...], 0.0)                 # (Cin, TL) f32
    if mxu_bf16:
        h = h.astype(jnp.bfloat16)

    # ---- pointwise 1x1 conv: MXU-native (Cout,Cin) . (Cin,TL) -> (Cout,TL) ----
    y = jnp.dot(wpw_ref[...], h, preferred_element_type=jnp.float32)

    # ---- folded BN2 bias + ReLU; output already in NCL layout ----
    out_ref[0] = jnp.maximum(y + b2_ref[...], 0.0)


def mobile_block1d(x_ncl, params, *, kernel_size, stride=1, dilation=1,
                   l_tile=None, act_bf16=True, mxu_bf16=True):
    """Forward pass of MobileBlock1d.

    x_ncl : (B, Cin, L) float32  -- PyTorch NCL layout
    returns (B, Cout, Lout) float32 (same NCL layout).
    act_bf16 / mxu_bf16 lower activation-storage / MXU-operand precision
    (inference-friendly); set both False for an f32-exact path.
    """
    eps = 1e-5
    (w_dw, b_dw, g1, be1, m1, v1, w_pw, b_pw, g2, be2, m2, v2) = params

    B, Cin, L = x_ncl.shape
    Cout = w_pw.shape[0]
    K = kernel_size
    d = dilation
    pad = (K + (d - 1) * (K - 1) - stride) // 2
    halo_len = d * (K - 1)
    l_full = L + 2 * pad - halo_len            # number of stride-1 output positions
    assert l_full >= 1, "sequence too short for this kernel/dilation"

    act_dtype = jnp.bfloat16 if act_bf16 else jnp.float32
    act_bytes = 2 if act_bf16 else 4
    f32 = jnp.float32

    # ---- L-tile selection: ~1 MiB of activation per grid step, 128-multiple ----
    HB = max(128, pl.cdiv(max(halo_len, 1), 128) * 128)     # halo block lanes
    tiled = l_full > 128
    if tiled:
        if l_tile is not None:
            tl = max(128, (l_tile // 128) * 128)
        else:
            target = 1 << 20                                 # ~1 MiB activation / step
            per_lane = 2 * Cin * act_bytes + 4 * Cout * 4 + 8 * Cin * 4
            cap = max(128, ((20 << 20) // per_lane // 128) * 128)   # VMEM budget cap
            want = max(128, (target // (Cin * act_bytes) // 128) * 128)
            tl = min(want, cap)
        tl = min(tl, pl.cdiv(l_full, 128) * 128)
        n_t = pl.cdiv(l_full, tl)
        if B * n_t < 2:                                      # v7x: feed both TCs
            tl = max(128, pl.cdiv(pl.cdiv(l_full, 2), 128) * 128)
            n_t = pl.cdiv(l_full, tl)
        if tl % HB != 0:                                     # pathological dilation
            tiled = False
    if not tiled:
        tl = l_full
        n_t = 1

    if tiled:
        ml = tl
        lp = max(n_t * tl + HB, pad + L)
        hstep = tl // HB
        main_map = lambda b, t: (b, 0, t)
        halo_shape = (1, Cin, HB)
        halo_map = lambda b, t: (b, 0, (t + 1) * hstep)
        use_halo = halo_len > 0
    else:
        ml = max(tl + halo_len, pad + L)                     # one block = whole padded L
        lp = ml
        main_map = lambda b, t: (b, 0, 0)
        halo_shape = (1, Cin, lp)                            # unused by kernel
        halo_map = lambda b, t: (b, 0, 0)
        use_halo = False

    # ---- wrapper prep: ONE fused cast(+pad) pass over the input, no transpose ----
    x_pad = jnp.pad(x_ncl.astype(act_dtype),
                    ((0, 0), (0, 0), (pad, lp - pad - L)))   # (B, Cin, Lp)

    # ---- fold BN running stats + conv biases into weights / per-channel adds ----
    s1 = g1 / jnp.sqrt(v1 + eps)                             # (Cin,)
    wdw_s = (w_dw[:, 0, :] * s1[:, None]).astype(f32)        # (Cin, K)
    b1 = (be1 + (b_dw - m1) * s1).reshape(Cin, 1).astype(f32)

    s2 = g2 / jnp.sqrt(v2 + eps)                             # (Cout,)
    mxu_dtype = jnp.bfloat16 if mxu_bf16 else f32
    wpw_s = (w_pw[:, :, 0] * s2[:, None]).astype(mxu_dtype)  # (Cout, Cin)
    b2 = (be2 + (b_pw - m2) * s2).reshape(Cout, 1).astype(f32)

    kernel = functools.partial(_mobile_block_kernel, kernel_size=K, dilation=d,
                               tl=tl, halo_len=max(halo_len, 1),
                               use_halo=use_halo, mxu_bf16=mxu_bf16)

    # advisory cost estimate for XLA scheduling around the custom call
    flops = 2 * B * l_full * Cin * (K + Cout)
    bytes_accessed = int(B * lp * Cin * act_bytes + B * Cout * l_full * 4
                         + Cin * K * 4 + Cout * Cin * (2 if mxu_bf16 else 4)
                         + Cin * 4 + Cout * 4)
    cost = pl.CostEstimate(flops=flops, transcendentals=0,
                           bytes_accessed=bytes_accessed)

    # explicit scoped-VMEM limit (>= v6e default 32 MiB, <= v7x physical 64 MiB)
    step_bytes = ((ml + (HB if tiled else 0)) * Cin * act_bytes
                  + tl * Cout * 4
                  + Cin * (K + 1) * 4 + Cout * (Cin + 1) * 4)
    vmem_limit = int(min(48 << 20, max(32 << 20, 4 * step_bytes + (16 << 20))))

    out_full = pl.pallas_call(
        kernel,
        out_shape=jax.ShapeDtypeStruct((B, Cout, l_full), jnp.float32),
        grid_spec=pltpu.PrefetchScalarGridSpec(
            num_scalar_prefetch=0,
            grid=(B, n_t),
            in_specs=[
                pl.BlockSpec((1, Cin, ml), main_map),          # main input lanes
                pl.BlockSpec(halo_shape, halo_map),            # halo lanes
                pl.BlockSpec((Cin, K), lambda b, t: (0, 0)),   # wdw * s1
                pl.BlockSpec((Cin, 1), lambda b, t: (0, 0)),   # b1
                pl.BlockSpec((Cout, Cin), lambda b, t: (0, 0)),  # wpw * s2
                pl.BlockSpec((Cout, 1), lambda b, t: (0, 0)),  # b2
            ],
            out_specs=pl.BlockSpec((1, Cout, tl), lambda b, t: (b, 0, t)),
        ),
        compiler_params=pltpu.CompilerParams(
            dimension_semantics=("parallel", "parallel"),
            vmem_limit_bytes=vmem_limit),
        cost_estimate=cost,
    )(x_pad, x_pad, wdw_s, b1, wpw_s, b2)

    if stride > 1:
        # TODO(synk): stride>1 computes every stride-1 position then subsamples.
        out_full = out_full[:, :, ::stride]
    return out_full


def _reference(x_ncl, params, *, kernel_size, stride=1, dilation=1):
    """Pure-JAX reference (lax conv) for correctness check."""
    eps = 1e-5
    (w_dw, b_dw, g1, be1, m1, v1, w_pw, b_pw, g2, be2, m2, v2) = params
    Cin = x_ncl.shape[1]
    pad = (kernel_size + (dilation - 1) * (kernel_size - 1) - stride) // 2

    y = jax.lax.conv_general_dilated(
        x_ncl, w_dw, window_strides=(stride,), padding=[(pad, pad)],
        rhs_dilation=(dilation,), feature_group_count=Cin,
        dimension_numbers=("NCH", "OIH", "NCH"))
    y = y + b_dw[None, :, None]
    y = (y - m1[None, :, None]) / jnp.sqrt(v1[None, :, None] + eps)
    y = y * g1[None, :, None] + be1[None, :, None]
    y = jnp.maximum(y, 0.0)

    z = jax.lax.conv_general_dilated(
        y, w_pw, window_strides=(1,), padding=[(0, 0)],
        dimension_numbers=("NCH", "OIH", "NCH"))
    z = z + b_pw[None, :, None]
    z = (z - m2[None, :, None]) / jnp.sqrt(v2[None, :, None] + eps)
    z = z * g2[None, :, None] + be2[None, :, None]
    return jnp.maximum(z, 0.0)


if __name__ == "__main__":
    key = jax.random.PRNGKey(0)

    def make_params(k, Cin, Cout, K):
        ks = jax.random.split(k, 12)
        w_dw = jax.random.normal(ks[0], (Cin, 1, K), jnp.float32) * 0.3
        b_dw = jax.random.normal(ks[1], (Cin,), jnp.float32) * 0.1
        g1 = 1.0 + 0.1 * jax.random.normal(ks[2], (Cin,), jnp.float32)
        be1 = 0.1 * jax.random.normal(ks[3], (Cin,), jnp.float32)
        m1 = 0.1 * jax.random.normal(ks[4], (Cin,), jnp.float32)
        v1 = jnp.abs(jax.random.normal(ks[5], (Cin,), jnp.float32)) + 0.5
        w_pw = jax.random.normal(ks[6], (Cout, Cin, 1), jnp.float32) * 0.3
        b_pw = jax.random.normal(ks[7], (Cout,), jnp.float32) * 0.1
        g2 = 1.0 + 0.1 * jax.random.normal(ks[8], (Cout,), jnp.float32)
        be2 = 0.1 * jax.random.normal(ks[9], (Cout,), jnp.float32)
        m2 = 0.1 * jax.random.normal(ks[10], (Cout,), jnp.float32)
        v2 = jnp.abs(jax.random.normal(ks[11], (Cout,), jnp.float32)) + 0.5
        return (w_dw, b_dw, g1, be1, m1, v1, w_pw, b_pw, g2, be2, m2, v2)

    k1, k2, k3, k4 = jax.random.split(key, 4)

    # --- case 1: tiny single-tile block (B=2, Cin=4, Cout=8, L=16, K=3) ---
    x1 = jax.random.normal(k1, (2, 4, 16), jnp.float32)
    p1 = make_params(k2, 4, 8, 3)
    ref1 = _reference(x1, p1, kernel_size=3)

    out1 = jax.block_until_ready(
        mobile_block1d(x1, p1, kernel_size=3, act_bf16=False, mxu_bf16=False))
    assert out1.shape == ref1.shape, (out1.shape, ref1.shape)
    err = float(jnp.max(jnp.abs(out1 - ref1)))
    assert err < 1e-4, err

    out1b = jax.block_until_ready(
        mobile_block1d(x1, p1, kernel_size=3))          # default bf16 act + MXU
    err = float(jnp.max(jnp.abs(out1b - ref1)))
    assert err < 1e-1, err

    # --- case 2: tiled path with halo, dilation=2, auto tile size ---
    x2 = jax.random.normal(k3, (2, 8, 256), jnp.float32)
    p2 = make_params(jax.random.fold_in(key, 7), 8, 16, 3)
    ref2 = _reference(x2, p2, kernel_size=3, dilation=2)
    out2 = jax.block_until_ready(
        mobile_block1d(x2, p2, kernel_size=3, dilation=2,
                       act_bf16=False, mxu_bf16=False))
    assert out2.shape == ref2.shape, (out2.shape, ref2.shape)
    err = float(jnp.max(jnp.abs(out2 - ref2)))
    assert err < 1e-4, err

    # --- case 3: multi-tile with a partial last L tile (l_out % 128 != 0) ---
    x3 = jax.random.normal(k4, (1, 16, 300), jnp.float32)
    p3 = make_params(jax.random.fold_in(key, 11), 16, 32, 3)
    ref3 = _reference(x3, p3, kernel_size=3)
    out3 = jax.block_until_ready(
        mobile_block1d(x3, p3, kernel_size=3, l_tile=128,
                       act_bf16=False, mxu_bf16=False))
    assert out3.shape == ref3.shape, (out3.shape, ref3.shape)
    err = float(jnp.max(jnp.abs(out3 - ref3)))
    assert err < 1e-4, err

    # --- case 4: stride=2 (compute-all + subsample fallback) ---
    x4 = jax.random.normal(jax.random.fold_in(key, 13), (2, 4, 16), jnp.float32)
    p4 = make_params(jax.random.fold_in(key, 17), 4, 8, 3)
    ref4 = _reference(x4, p4, kernel_size=3, stride=2)
    out4 = jax.block_until_ready(
        mobile_block1d(x4, p4, kernel_size=3, stride=2,
                       act_bf16=False, mxu_bf16=False))
    assert out4.shape == ref4.shape, (out4.shape, ref4.shape)
    err = float(jnp.max(jnp.abs(out4 - ref4)))
    assert err < 1e-4, err

    print("KERNEL_OK")
</pallas_src>

<mosaic_0001>
module attributes {stable_mosaic.version = 11 : i64} {
  func.func @_mobile_block_kernel(%arg0: i32, %arg1: i32, %arg2: memref<1x4x18xf32, #tpu.memory_space<vmem>>, %arg3: memref<1x4x18xf32, #tpu.memory_space<vmem>>, %arg4: memref<4x3xf32, #tpu.memory_space<vmem>>, %arg5: memref<4x1xf32, #tpu.memory_space<vmem>>, %arg6: memref<8x4xf32, #tpu.memory_space<vmem>>, %arg7: memref<8x1xf32, #tpu.memory_space<vmem>>, %arg8: memref<1x8x16xf32, #tpu.memory_space<vmem>>) attributes {dimension_semantics = [#tpu.dimension_semantics<parallel>, #tpu.dimension_semantics<parallel>], iteration_bounds = array<i64: 2, 1>, scalar_prefetch = 0 : i64, scratch_operands = 0 : i64, tpu.core_type = #tpu.core_type<tc>, window_params = [{transform_indices = @transform_0, window_bounds = array<i64: 1, 4, 18>}, {transform_indices = @transform_1, window_bounds = array<i64: 1, 4, 18>}, {pipeline_mode = #tpu.pipeline_mode<synchronous>, transform_indices = @transform_2, window_bounds = array<i64: 4, 3>}, {pipeline_mode = #tpu.pipeline_mode<synchronous>, transform_indices = @transform_3, window_bounds = array<i64: 4, 1>}, {pipeline_mode = #tpu.pipeline_mode<synchronous>, transform_indices = @transform_4, window_bounds = array<i64: 8, 4>}, {pipeline_mode = #tpu.pipeline_mode<synchronous>, transform_indices = @transform_5, window_bounds = array<i64: 8, 1>}, {transform_indices = @transform_6, window_bounds = array<i64: 1, 8, 16>}]} {
    %c0 = arith.constant 0 : index
    %c0_0 = arith.constant 0 : index
    %c0_1 = arith.constant 0 : index
    %0 = vector.load %arg2[%c0, %c0_0, %c0_1] : memref<1x4x18xf32, #tpu.memory_space<vmem>>, vector<1x4x18xf32>
    %1 = vector.shape_cast %0 : vector<1x4x18xf32> to vector<4x18xf32>
    %c0_2 = arith.constant 0 : index
    %c0_3 = arith.constant 0 : index
    %2 = vector.load %arg4[%c0_2, %c0_3] : memref<4x3xf32, #tpu.memory_space<vmem>>, vector<4x3xf32>
    %3 = vector.extract_strided_slice %1 {offsets = [0, 0], sizes = [4, 16], strides = [1, 1]} : vector<4x18xf32> to vector<4x16xf32>
    %4 = vector.extract_strided_slice %2 {offsets = [0, 0], sizes = [4, 1], strides = [1, 1]} : vector<4x3xf32> to vector<4x1xf32>
    %5 = vector.broadcast %4 : vector<4x1xf32> to vector<4x16xf32>
    %6 = arith.mulf %3, %5 : vector<4x16xf32>
    %7 = vector.extract_strided_slice %1 {offsets = [0, 1], sizes = [4, 16], strides = [1, 1]} : vector<4x18xf32> to vector<4x16xf32>
    %8 = vector.extract_strided_slice %2 {offsets = [0, 1], sizes = [4, 1], strides = [1, 1]} : vector<4x3xf32> to vector<4x1xf32>
    %9 = vector.broadcast %8 : vector<4x1xf32> to vector<4x16xf32>
    %10 = arith.mulf %7, %9 : vector<4x16xf32>
    %11 = arith.addf %6, %10 : vector<4x16xf32>
    %12 = vector.extract_strided_slice %1 {offsets = [0, 2], sizes = [4, 16], strides = [1, 1]} : vector<4x18xf32> to vector<4x16xf32>
    %13 = vector.extract_strided_slice %2 {offsets = [0, 2], sizes = [4, 1], strides = [1, 1]} : vector<4x3xf32> to vector<4x1xf32>
    %14 = vector.broadcast %13 : vector<4x1xf32> to vector<4x16xf32>
    %15 = arith.mulf %12, %14 : vector<4x16xf32>
    %16 = arith.addf %11, %15 : vector<4x16xf32>
    %c0_4 = arith.constant 0 : index
    %c0_5 = arith.constant 0 : index
    %17 = vector.load %arg5[%c0_4, %c0_5] : memref<4x1xf32, #tpu.memory_space<vmem>>, vector<4x1xf32>
    %18 = vector.broadcast %17 : vector<4x1xf32> to vector<4x16xf32>
    %19 = arith.addf %16, %18 : vector<4x16xf32>
    %cst = arith.constant 0.000000e+00 : f32
    %20 = vector.broadcast %cst : f32 to vector<4x16xf32>
    %21 = arith.maximumf %19, %20 : vector<4x16xf32>
    %c0_6 = arith.constant 0 : index
    %c0_7 = arith.constant 0 : index
    %22 = vector.load %arg6[%c0_6, %c0_7] : memref<8x4xf32, #tpu.memory_space<vmem>>, vector<8x4xf32>
    %cst_8 = arith.constant dense<0.000000e+00> : vector<8x16xf32>
    %23 = tpu.matmul %22, %21, %cst_8 {dimension_numbers = #tpu.dot_dimension_numbers<[1], [0], [0], [1], [0, 0, 1, 1], [], []>} : vector<8x4xf32>, vector<4x16xf32>, vector<8x16xf32> -> vector<8x16xf32>
    %c0_9 = arith.constant 0 : index
    %c0_10 = arith.constant 0 : index
    %24 = vector.load %arg7[%c0_9, %c0_10] : memref<8x1xf32, #tpu.memory_space<vmem>>, vector<8x1xf32>
    %25 = vector.broadcast %24 : vector<8x1xf32> to vector<8x16xf32>
    %26 = arith.addf %23, %25 : vector<8x16xf32>
    %cst_11 = arith.constant 0.000000e+00 : f32
    %27 = vector.broadcast %cst_11 : f32 to vector<8x16xf32>
    %28 = arith.maximumf %26, %27 : vector<8x16xf32>
    %c0_12 = arith.constant 0 : index
    %c0_13 = arith.constant 0 : index
    %c0_14 = arith.constant 0 : index
    %29 = vector.load %arg8[%c0_12, %c0_13, %c0_14] : memref<1x8x16xf32, #tpu.memory_space<vmem>>, vector<1x8x16xf32>
    %30 = vector.shape_cast %29 : vector<1x8x16xf32> to vector<8x16xf32>
    %31 = vector.shape_cast %28 : vector<8x16xf32> to vector<1x8x16xf32>
    tpu.vector_store %arg8[%c0_12, %c0_13, %c0_14], %31 {strides = array<i32>} : memref<1x8x16xf32, #tpu.memory_space<vmem>>, vector<1x8x16xf32>,
    return
  }
  func.func @transform_0(%arg0: i32, %arg1: i32) -> (i32, i32, i32) {
    %c0_i32 = arith.constant 0 : i32
    %c0_i32_0 = arith.constant 0 : i32
    %c0_i32_1 = arith.constant 0 : i32
    return %arg0, %c0_i32, %c0_i32_0 : i32, i32, i32
  }
  func.func @transform_1(%arg0: i32, %arg1: i32) -> (i32, i32, i32) {
    %c0_i32 = arith.constant 0 : i32
    %c0_i32_0 = arith.constant 0 : i32
    %c0_i32_1 = arith.constant 0 : i32
    return %arg0, %c0_i32, %c0_i32_0 : i32, i32, i32
  }
  func.func @transform_2(%arg0: i32, %arg1: i32) -> (i32, i32) {
    %c0_i32 = arith.constant 0 : i32
    %c0_i32_0 = arith.constant 0 : i32
    %c0_i32_1 = arith.constant 0 : i32
    return %c0_i32, %c0_i32_0 : i32, i32
  }
  func.func @transform_3(%arg0: i32, %arg1: i32) -> (i32, i32) {
    %c0_i32 = arith.constant 0 : i32
    %c0_i32_0 = arith.constant 0 : i32
    %c0_i32_1 = arith.constant 0 : i32
    return %c0_i32, %c0_i32_0 : i32, i32
  }
  func.func @transform_4(%arg0: i32, %arg1: i32) -> (i32, i32) {
    %c0_i32 = arith.constant 0 : i32
    %c0_i32_0 = arith.constant 0 : i32
    %c0_i32_1 = arith.constant 0 : i32
    return %c0_i32, %c0_i32_0 : i32, i32
  }
  func.func @transform_5(%arg0: i32, %arg1: i32) -> (i32, i32) {
    %c0_i32 = arith.constant 0 : i32
    %c0_i32_0 = arith.constant 0 : i32
    %c0_i32_1 = arith.constant 0 : i32
    return %c0_i32, %c0_i32_0 : i32, i32
  }
  func.func @transform_6(%arg0: i32, %arg1: i32) -> (i32, i32, i32) {
    %c0_i32 = arith.constant 0 : i32
    %c0_i32_0 = arith.constant 0 : i32
    return %arg0, %c0_i32, %arg1 : i32, i32, i32
  }
}

</mosaic_0001>

<bundles_post_ra>
// kernel: tpu_custom_call.1
= control target key start
LH: loop header
LB: loop body
LE: loop exit
PB: predicated region body
PF: predicated region fallthrough
CT: control target
= control target key end

     0   :  { %11 = vsyncpa [#allocation3], 0  ;;  %s756_s0 = inlined_call_operand.vmem [shape: f32[2,4,18], index: 0, kind: input, shape index: {}]   ;;  %s757_s1 = inlined_call_operand.vmem [shape: f32[2,4,18], index: 1, kind: input, shape index: {}]   ;;  %s758_s2 = inlined_call_operand.vmem [shape: f32[4,3], index: 2, kind: input, shape index: {}]   ;;  %s759_s3 = inlined_call_operand.vmem [shape: f32[4,1], index: 3, kind: input, shape index: {}]   ;;  %s760_s4 = inlined_call_operand.vmem [shape: f32[8,4], index: 4, kind: input, shape index: {}]   ;;  %s761_s5 = inlined_call_operand.vmem [shape: f32[8,1], index: 5, kind: input, shape index: {}]   ;;  %s762_s6 = inlined_call_operand.hbm [shape: f32[2,8,16], index: 6, kind: output, shape index: {}]  }
   0x1   :  { %13 = vsyncpa [#allocation3 + $0x1], 0  ;;  %s647_s21 = smov 0   ;;  %s649_s1 = smov 0  }
   0x2   :  { %s651_s22 = smov 0   ;;  %s653_s23 = smov 0  }
   0x3   :  { %s655_s24 = smov 0   ;;  %s657_s25 = smov 0  }
   0x4 LB: > { %s449_s26 = sadd.s32 4294967295, %s605_s25   ;;  %s450_s27 = sadd.s32 4294967294, %s605_s25   ;;  %s605_s25 = sphi %s657_s25, %s19_s25   ;;  %s601_s24 = sphi %s655_s24, %s769_s24   ;;  %s597_s23 = sphi %s653_s23, %s768_s23   ;;  %s593_s22 = sphi %s651_s22, %s767_s22   ;;  %s589_s1 = sphi %s649_s1, %s766_s1   ;;  %s585_s21 = sphi %s647_s21, %s765_s21  }
   0x5   : > { %s31_s28 = sadd.s32 1, %s601_s24  ;;  %s176_s29 = sadd.s32 1, %s593_s22 }
   0x6   : > { %p33_p0 = scmp.ge.s32.totalorder %s31_s28, 2  ;;  %p186_p1 = scmp.ne.s32.totalorder %s593_s22, %s589_s1 }
   0x7   : > { %p187_p2 = scmp.eq.s32.totalorder %s449_s26, 1  ;;  %p192_p3 = scmp.ne.s32.totalorder %s589_s1, %s585_s21 }
   0x8   : > { %s771_s28 = smov (%p33_p0, %s31_s28), 0  ;;  %p193_p5 = scmp.eq.s32.totalorder %s450_s27, 1 }
   0x9   : > { %p687_p4 = por %p187_p2, %p186_p1  ;;  %s171_s7 = ssub.s32 %s601_s24, %s771_s28 }
   0xa   : > { %p453_p6 = scmp.ge.s32.totalorder %s605_s25, 1  ;;  %p174_p7 = scmp.eq.s32.totalorder %s171_s7, 0 }
   0xb   : > { %p694_p8 = por %p193_p5, %p192_p3  ;;  %p237_p9 = scmp.lt.s32.totalorder %s605_s25, 3 }
   0xc   : > { %s700_s9 = scalar_select %p174_p7, %s593_s22, %s176_s29  }
   0xd   : > { %p238_p10 = pnand %p453_p6, %p237_p9 }
   0xe   : > { %p270_p11 = scmp.lt.s32.totalorder (!%p238_p10), %s597_s23, 1  ;;  %s610_s17 = smov (!%p238_p10), 127  }
   0xf   : > { %241 = sbr.rel (%p238_p10) target bundleno = 396 (0x18c), region = 44  ;;  %s611_s20 = smov (!%p238_p10), 126  }
  0x10   : > { %s267_s10 = sand.u32 (!%p238_p10), 1, %s589_s1   ;;  %s547_s29 = scalar_lea.hbm (!%p238_p10), %s762_s6, 16 }
  0x11   : > { %s454_s11 = sshll.u32 (!%p238_p10), %s267_s10, 3  ;;  %s353_s19 = scalar_lea.sflag (!%p238_p10), [#allocation3], %s267_s10 }
  0x14   : > { %v279_v0 = vld [vmem:[%s758_s2] sm:$0xf]  ;;  %v607_v1 = vmov 1   ;;  %v608_v2 = vmov 0   ;;  %v609_v3 = vmov 2   ;;  %s271_s12 = scalar_select %p270_p11, %s597_s23, 1 }
  0x15   : > { %522 = vset.pattern.permute.xlu0 %v607_v1  ;;  %524 = vset.pattern.permute.xlu1 %v608_v2  ;;  %v315_v7 = vld [vmem:[%s761_s5] sm:$0xff]  ;;  %vm325_vm0 = vcmask 1043456   ;;  %vm321_vm1 = vcmask 31744   ;;  %vm350_vm2 = vcmask 130048  }
  0x16   : > { %287 = vperm.xlu0 %522, %v279_v0   ;;  %282 = vperm.xlu1 %524, %v279_v0   ;;  %s455_s13 = sshll.u32 %s271_s12, 2  ;;  %v306_v10 = vld [vmem:[%s759_s3] sm:$0xf]  ;;  %s459_s12 = sshll.u32 %s597_s23, 3 }
  0x17   : > { %525 = vset.pattern.permute.xlu2 %v608_v2  ;;  %s273_s16 = scalar_lea.vmem %s756_s0, %s455_s13  ;;  %v314_v20 = vld [vmem:[%s760_s4] sm:$0xff]  ;;  %s364_s15 = scalar_lea.hbm %s762_s6, %s459_s12 }
  0x18   : > { %v278_v4 = vld [vmem:[%s273_s16] sm:$0xf]  ;;  %s269_s16 = scalar_lea.vmem [#allocation2], %s454_s11  ;;  %s368_s18 = sshll.u32 %s364_s15, 4  ;;  %s369_s18 = int_to_ptr.hbm [resolvable:$true] %s368_s18 }
  0x1e   : > { %523 = vset.pattern.permute.xlu0 %v609_v3 }
  0x1f   : > { %297 = vperm.xlu0 %523, %v279_v0  }
  0x27   : > { %526 = vset.pattern.permute.xlu0 %v608_v2 }
  0x88   : > { %v288_v5 = vpop.permute.xlu0 %287  ;;  %v283_v11 = vpop.permute.xlu1 %282 }
  0x89   : > { %v290_v6 = vmul.f32 %v288_v5, %v278_v4  ;;  %v285_v13 = vmul.f32 %v283_v11, %v278_v4 }
  0x8b   : > { %292 = vrot.lane.b32.xlu1 %v290_v6, %s610_s17  ;;  %s366_s17 = sshll.u32 %s269_s16, 4  ;;  %s367_s17 = int_to_ptr.vmem [resolvable:$true] %s366_s17 }
  0x91   : > { %v298_v8 = vpop.permute.xlu0 %297 }
  0x92   : > { %v300_v9 = vmul.f32 %v298_v8, %v278_v4 }
  0x93   : > { %318 = vperm.xlu1 %524, %v315_v7  }
  0x94   : > { %302 = vrot.lane.b32.xlu2 %v300_v9, %s611_s20  ;;  %s541_s20 = sshra.s32 %s369_s18, 4  ;;  %s542_s20 = int_to_ptr.hbm [resolvable:$true] %s541_s20 }
  0x95   : > { %s543_s23 = scalar_lea.hbm %s542_s20, 8  ;;  %p548_p1 = scmp.lt.s32.totalorder %s542_s20, %s762_s6 }
  0x96   : > { %p544_p12 = scmp.ne.s32.totalorder %s542_s20, %s543_s23  ;;  %p549_p2 = scmp.lt.s32.totalorder %s547_s29, %s543_s23 }
  0x98   : > { %p545_p13 = pnand %p544_p12, %p687_p4  ;;  %p550_p3 = por %p549_p2, %p548_p1 }
  0x9a   : > { %p546_p0 = pneg %p545_p13 }
  0x9c   : > { %309 = vperm.xlu2 %525, %v306_v10   ;;  %p551_p5 = pnand %p550_p3, %p546_p0 }
  0xee   : > { %v303_v12 = vpop.permute.xlu2 %302 }
  0xf6   : > { %v310_v16 = vpop.permute.xlu2 %309 }
  0xfd   : > { %v293_v14 = vpop.permute.xlu1 %292 }
  0xfe   : > { %v295_v15 = vadd.f32 %v293_v14, %v285_v13 }
 0x100   : > { %v305_v17 = vadd.f32 %v303_v12, %v295_v15 }
 0x102   : > { %v312_v18 = vadd.f32 %v310_v16, %v305_v17 }
 0x104   : > { %v313_v19 = vmax.f32 %v312_v18, 0.0 }
 0x105   : > { %v319_v21 = vpop.permute.xlu1 %318 }
 0x106   : > { %456 = vmatpush.msk.msra.mxu0 %vm325_vm0, %v313_v19 }
 0x107   : > { %457 = vmatmul.msk.f32.vlgmr.msra.gmra.mxu0 %vm321_vm1, %v314_v20 }
 0x184   : > { %v346_v22 = vpop.f32.mrf.mxu0 }
 0x185   : > { %v347_v23 = vadd.f32 %v346_v22, %v319_v21 }
 0x187   : > { %v349_v24 = vmax.f32 %v347_v23, 0.0 }
 0x189   : > { %351 = vst.msk [vmem:[%s269_s16] sm:$0xff] %vm350_vm2, %v349_v24 }
 0x18a   : > { %554 = shalt.err (!%p551_p5)
}
 0x18b   : > { %462 = dma.vmem_to_hbm [thread:$0]  (%p687_p4), %s367_s17, 128, %s369_s18, %s353_s19  }
 0x18c PF: > { %p468_p6 = scmp.ge.s32.totalorder %s605_s25, 2  ;;  %s380_s10 = sand.u32 1, %s585_s21  }
 0x18d   : > { %s381_s12 = scalar_lea.sflag [#allocation3], %s380_s10 }
 0x18e   : > { %p465_p7 = pnand %p468_p6, %p694_p8 }
 0x190   : > { %p466_p9 = pneg %p465_p7 }
 0x192   : > { %580 = dma.done.wait (%p466_p9), %s381_s12, 128  }
 0x193   : > { %582 = vsyncadd (%p466_p9), %s381_s12, 4294967168  ;;  %s19_s25 = sadd.s32 1, %s605_s25   ;;  %s765_s21 = smov %s589_s1 }
 0x194   : > { %p16_p10 = scmp.ge.s32.totalorder %s19_s25, 4   ;;  %s766_s1 = smov %s593_s22 }
 0x195   : > { %s767_s22 = smov %s700_s9  ;;  %s768_s23 = smov %s601_s24 }
 0x196   : > { %s769_s24 = smov %s771_s28  ;;  %18 = sbr.rel (!%p16_p10) target bundleno = 4 (0x4), region = 82 }
 0x19b   :  { %387 = vsyncpa [#allocation3], 1 }
 0x19c   :  { %389 = vsyncpa [#allocation3 + $0x1], 1 }

</bundles_post_ra>
